<compile_context>
chip_gen: v7x
topology: tpu7x:2x2x1
jax: 0.10.0
libtpu: 0.0.40
codegen_flags: <defaults>
</compile_context>

<pallas_src>
import functools

import jax
import jax.numpy as jnp
from jax.experimental import pallas as pl
from jax.experimental.pallas import tpu as pltpu

_LOG_2PI = 1.8378770664093453  # log(2*pi)
_LOG_2 = 0.6931471805599453
_VMEM_LIMIT = 32 * 1024 * 1024  # safe on v5e/v6e/v7x; blocks are capped well below


# ------------------------------ tile pickers ----------------------------------
def _pick_lane_tile(b, max_lanes=2048):
    """Lane (batch) tile: multiple-of-128 divisor of b, or b itself (full dim).
    For large b, aim for >=2 grid steps so the 'parallel' axis can shard across
    both TensorCores on v7x."""
    if b <= 256:
        return b
    cap = min(max_lanes, b // 2)
    t = cap - cap % 128
    while t >= 128:
        if b % t == 0:
            return t
        t -= 128
    return b  # no nice divisor: single full block (still correct)


def _pick_s_tile(s, max_s=2048):
    """Sample (lane) tile for eval: multiple-of-128 divisor of S, or S itself."""
    if s <= max_s:
        return s
    t = max_s - max_s % 128
    while t >= 128:
        if s % t == 0:
            return t
        t -= 128
    return s


def _pick_row_tile(rows, s_tile, max_block_bytes=4 << 20):
    """Row (sublane) tile for eval: multiple-of-8 divisor of rows (or rows),
    capped so one (tile, s_tile) f32 block stays under max_block_bytes."""
    max_rows = max(8, max_block_bytes // (4 * s_tile))
    if rows <= max_rows:
        return rows
    t = max_rows - max_rows % 8
    while t >= 8:
        if rows % t == 0:
            return t
        t -= 8
    # TODO(synk): pathological (prime) B*N with huge S falls back to one block;
    #             ragged tiling would bound VMEM here.
    return rows


# --------------------------- training kernel ---------------------------------
def _train_kernel(x_ref, eps_ref, act_ref, logp_ref, *, n):
    # x_ref: (2n, TB) with batch on lanes; rows 0:n = mean, rows n:2n = log_std.
    # eps_ref/act_ref: (n, TB); logp_ref: (1, TB) (lane-dense store).
    xv = x_ref[...].astype(jnp.float32)
    mean = xv[:n, :]                               # static sublane slice
    log_std = jnp.clip(xv[n:, :], -18.0, 4.6)
    std = jnp.exp(log_std)                         # EUP push #1
    eps = eps_ref[...].astype(jnp.float32)

    z = mean + std * eps                           # pre-tanh rsample
    y = jnp.tanh(z)                                # EUP push #2 (exact HW tanh)

    # Normal(mean, std).log_prob(z) with z = mean + std*eps
    #   = -(eps^2)/2 - log_std - log(2pi)/2
    normal_lp = -0.5 * eps * eps - log_std - 0.5 * _LOG_2PI
    # softplus(-2z) = max(-2z, 0) + log1p(exp(-2|z|))   (numerically stable)
    sp = jnp.maximum(-2.0 * z, 0.0) + jnp.log1p(jnp.exp(-2.0 * jnp.abs(z)))  # EUP #3/#4
    # TanhTransform.log_abs_det_jacobian(z, y) = 2*(log2 - z - softplus(-2z))
    ladj = 2.0 * (_LOG_2 - z - sp)
    lp = normal_lp - ladj

    act_ref[...] = y.astype(act_ref.dtype)
    # sum over action dim = cross-sublane (XLU) reduction -> (1, TB) lane-dense.
    logp_ref[...] = jnp.sum(lp, axis=0, keepdims=True).astype(logp_ref.dtype)


# ----------------------------- eval kernel ------------------------------------
def _eval_kernel(mean_ref, logstd_ref, eps_ref, act_ref, acc_ref, *, inv_s):
    # mean/logstd/act: (TR, 1); eps: (TR, TS); rows = B*N on sublanes, S on lanes.
    s_idx = pl.program_id(1)

    @pl.when(s_idx == 0)
    def _():
        acc_ref[...] = jnp.zeros_like(acc_ref)

    mean = mean_ref[...].astype(jnp.float32)
    std = jnp.exp(jnp.clip(logstd_ref[...].astype(jnp.float32), -18.0, 4.6))
    z = mean + std * eps_ref[...].astype(jnp.float32)         # (TR, TS), lane-dense
    acc_ref[...] += jnp.sum(jnp.tanh(z), axis=-1, keepdims=True)

    @pl.when(s_idx == pl.num_programs(1) - 1)
    def _():
        act_ref[...] = (acc_ref[...] * inv_s).astype(act_ref.dtype)


# ------------------------------ wrapper ---------------------------------------
def squashed_gaussian_head(x, eps, *, is_training=True):
    """x: (B, 2N).  eps: (B, N) if training, else (B, N, S) (sample axis minor).

    Returns {'action', 'action_logprob'} (training) or {'action'} (eval)."""
    B, two_n = x.shape
    n = two_n // 2
    dt = x.dtype

    if is_training:
        assert eps.shape == (B, n)
        # Lane-dense layout: batch on lanes, features on sublanes.  Transposing
        # the tiny (B, 2n)/(B, n) tensors is layout plumbing; the kernel never
        # lane-slices the feature axis.
        x_t = x.T                       # (2n, B)
        eps_t = eps.T                   # (n, B)
        tb = _pick_lane_tile(B)
        grid = (B // tb,)
        act_t, logp_t = pl.pallas_call(
            functools.partial(_train_kernel, n=n),
            grid=grid,
            in_specs=[
                pl.BlockSpec((two_n, tb), lambda i: (0, i)),
                pl.BlockSpec((n, tb), lambda i: (0, i)),
            ],
            out_specs=(
                pl.BlockSpec((n, tb), lambda i: (0, i)),
                pl.BlockSpec((1, tb), lambda i: (0, i)),
            ),
            out_shape=(
                jax.ShapeDtypeStruct((n, B), dt),
                jax.ShapeDtypeStruct((1, B), dt),
            ),
            compiler_params=pltpu.CompilerParams(
                dimension_semantics=("parallel",),
                vmem_limit_bytes=_VMEM_LIMIT,
            ),
        )(x_t, eps_t)
        return {"action": act_t.T, "action_logprob": logp_t.T}
    else:
        S = eps.shape[-1]
        assert eps.shape == (B, n, S)
        rows = B * n
        # Row-major reshape: no data movement; rows fill sublanes, S on lanes.
        eps2 = eps.reshape(rows, S)
        # Per-row mean / log_std columns (tiny relative to eps; broadcast on lanes
        # in-kernel).
        mean_col = x[:, :n].reshape(rows, 1)
        logstd_col = x[:, n:].reshape(rows, 1)

        ts = _pick_s_tile(S)
        tr = _pick_row_tile(rows, ts)
        grid = (rows // tr, S // ts)
        act_col = pl.pallas_call(
            functools.partial(_eval_kernel, inv_s=1.0 / S),
            grid=grid,
            in_specs=[
                pl.BlockSpec((tr, 1), lambda r, s: (r, 0)),
                pl.BlockSpec((tr, 1), lambda r, s: (r, 0)),
                pl.BlockSpec((tr, ts), lambda r, s: (r, s)),
            ],
            out_specs=pl.BlockSpec((tr, 1), lambda r, s: (r, 0)),
            out_shape=jax.ShapeDtypeStruct((rows, 1), dt),
            scratch_shapes=[pltpu.VMEM((tr, 1), jnp.float32)],
            compiler_params=pltpu.CompilerParams(
                dimension_semantics=("parallel", "arbitrary"),
                vmem_limit_bytes=_VMEM_LIMIT,
            ),
        )(mean_col, logstd_col, eps2)
        return {"action": act_col.reshape(B, n)}


# ----------------------- pure-JAX references for checking ----------------------
def _ref_train(x, eps, n):
    mean = x[..., :n]
    log_std = jnp.clip(x[..., n:], -18.0, 4.6)
    std = jnp.exp(log_std)
    z = mean + std * eps
    y = jnp.tanh(z)
    normal_lp = -0.5 * eps * eps - log_std - 0.5 * _LOG_2PI
    ladj = 2.0 * (_LOG_2 - z - jax.nn.softplus(-2.0 * z))
    logp = jnp.sum(normal_lp - ladj, axis=-1, keepdims=True)
    return y, logp


def _ref_eval(x, eps, n):
    # eps: (B, N, S)
    mean = x[..., :n]
    log_std = jnp.clip(x[..., n:], -18.0, 4.6)
    std = jnp.exp(log_std)
    z = mean[..., None] + std[..., None] * eps
    return jnp.mean(jnp.tanh(z), axis=-1)


if __name__ == "__main__":
    B, N, S = 8, 4, 100   # batch, action dim, eval samples
    key = jax.random.PRNGKey(0)
    kx, ke, kes = jax.random.split(key, 3)

    x = jax.random.normal(kx, (B, 2 * N), dtype=jnp.float32)
    eps_train = jax.random.normal(ke, (B, N), dtype=jnp.float32)
    # Eval noise generated directly in kernel layout (B, N, S): one lane-dense
    # row of S samples per (batch, action) pair -> no wrapper transpose.
    eps_eval = jax.random.normal(kes, (B, N, S), dtype=jnp.float32)

    # training path
    out_tr = squashed_gaussian_head(x, eps_train, is_training=True)
    act = jax.block_until_ready(out_tr["action"])
    logp = jax.block_until_ready(out_tr["action_logprob"])
    ref_act, ref_logp = _ref_train(x, eps_train, N)
    assert act.shape == (B, N) and logp.shape == (B, 1)
    assert jnp.allclose(act, ref_act, atol=1e-5, rtol=1e-5)
    assert jnp.allclose(logp, ref_logp, atol=1e-4, rtol=1e-4)

    # eval path
    out_ev = squashed_gaussian_head(x, eps_eval, is_training=False)
    act_ev = jax.block_until_ready(out_ev["action"])
    ref_ev = _ref_eval(x, eps_eval, N)
    assert act_ev.shape == (B, N)
    assert jnp.allclose(act_ev, ref_ev, atol=1e-5, rtol=1e-5)

    print("KERNEL_OK")
</pallas_src>

<mosaic_0001>
module attributes {stable_mosaic.version = 11 : i64} {
  func.func @_train_kernel(%arg0: i32, %arg1: memref<8x8xf32, #tpu.memory_space<vmem>>, %arg2: memref<4x8xf32, #tpu.memory_space<vmem>>, %arg3: memref<4x8xf32, #tpu.memory_space<vmem>>, %arg4: memref<1x8xf32, #tpu.memory_space<vmem>>) attributes {dimension_semantics = [#tpu.dimension_semantics<parallel>], iteration_bounds = array<i64: 1>, scalar_prefetch = 0 : i64, scratch_operands = 0 : i64, tpu.core_type = #tpu.core_type<tc>, window_params = [{transform_indices = @transform_0, window_bounds = array<i64: 8, 8>}, {transform_indices = @transform_1, window_bounds = array<i64: 4, 8>}, {transform_indices = @transform_2, window_bounds = array<i64: 4, 8>}, {transform_indices = @transform_3, window_bounds = array<i64: 1, 8>}]} {
    %c0 = arith.constant 0 : index
    %c0_0 = arith.constant 0 : index
    %0 = vector.load %arg1[%c0, %c0_0] : memref<8x8xf32, #tpu.memory_space<vmem>>, vector<8x8xf32>
    %1 = vector.extract_strided_slice %0 {offsets = [0, 0], sizes = [4, 8], strides = [1, 1]} : vector<8x8xf32> to vector<4x8xf32>
    %2 = vector.extract_strided_slice %0 {offsets = [4, 0], sizes = [4, 8], strides = [1, 1]} : vector<8x8xf32> to vector<4x8xf32>
    %cst = arith.constant -1.800000e+01 : f32
    %cst_1 = arith.constant 4.600000e+00 : f32
    %3 = vector.broadcast %cst : f32 to vector<4x8xf32>
    %4 = arith.maximumf %3, %2 : vector<4x8xf32>
    %5 = vector.broadcast %cst_1 : f32 to vector<4x8xf32>
    %6 = arith.minimumf %5, %4 : vector<4x8xf32>
    %7 = math.exp %6 : vector<4x8xf32>
    %c0_2 = arith.constant 0 : index
    %c0_3 = arith.constant 0 : index
    %8 = vector.load %arg2[%c0_2, %c0_3] : memref<4x8xf32, #tpu.memory_space<vmem>>, vector<4x8xf32>
    %9 = arith.mulf %7, %8 : vector<4x8xf32>
    %10 = arith.addf %1, %9 : vector<4x8xf32>
    %11 = math.tanh %10 : vector<4x8xf32>
    %cst_4 = arith.constant -5.000000e-01 : f32
    %12 = vector.broadcast %cst_4 : f32 to vector<4x8xf32>
    %13 = arith.mulf %12, %8 : vector<4x8xf32>
    %14 = arith.mulf %13, %8 : vector<4x8xf32>
    %15 = arith.subf %14, %6 : vector<4x8xf32>
    %cst_5 = arith.constant 0.918938517 : f32
    %16 = vector.broadcast %cst_5 : f32 to vector<4x8xf32>
    %17 = arith.subf %15, %16 : vector<4x8xf32>
    %cst_6 = arith.constant -2.000000e+00 : f32
    %18 = vector.broadcast %cst_6 : f32 to vector<4x8xf32>
    %19 = arith.mulf %18, %10 : vector<4x8xf32>
    %cst_7 = arith.constant 0.000000e+00 : f32
    %20 = vector.broadcast %cst_7 : f32 to vector<4x8xf32>
    %21 = arith.maximumf %19, %20 : vector<4x8xf32>
    %22 = math.absf %10 : vector<4x8xf32>
    %cst_8 = arith.constant -2.000000e+00 : f32
    %23 = vector.broadcast %cst_8 : f32 to vector<4x8xf32>
    %24 = arith.mulf %23, %22 : vector<4x8xf32>
    %25 = math.exp %24 : vector<4x8xf32>
    %26 = math.log1p %25 : vector<4x8xf32>
    %27 = arith.addf %21, %26 : vector<4x8xf32>
    %cst_9 = arith.constant 0.693147182 : f32
    %28 = vector.broadcast %cst_9 : f32 to vector<4x8xf32>
    %29 = arith.subf %28, %10 : vector<4x8xf32>
    %30 = arith.subf %29, %27 : vector<4x8xf32>
    %cst_10 = arith.constant 2.000000e+00 : f32
    %31 = vector.broadcast %cst_10 : f32 to vector<4x8xf32>
    %32 = arith.mulf %31, %30 : vector<4x8xf32>
    %33 = arith.subf %17, %32 : vector<4x8xf32>
    %c0_11 = arith.constant 0 : index
    %c0_12 = arith.constant 0 : index
    %34 = vector.load %arg3[%c0_11, %c0_12] : memref<4x8xf32, #tpu.memory_space<vmem>>, vector<4x8xf32>
    tpu.vector_store %arg3[%c0_11, %c0_12], %11 {strides = array<i32>} : memref<4x8xf32, #tpu.memory_space<vmem>>, vector<4x8xf32>,
    %cst_13 = arith.constant dense<0.000000e+00> : vector<8xf32>
    %35 = vector.multi_reduction <add>, %33, %cst_13 [0] : vector<4x8xf32> to vector<8xf32>
    %36 = vector.shape_cast %35 : vector<8xf32> to vector<1x8xf32>
    %c0_14 = arith.constant 0 : index
    %c0_15 = arith.constant 0 : index
    %37 = vector.load %arg4[%c0_14, %c0_15] : memref<1x8xf32, #tpu.memory_space<vmem>>, vector<1x8xf32>
    tpu.vector_store %arg4[%c0_14, %c0_15], %36 {strides = array<i32>} : memref<1x8xf32, #tpu.memory_space<vmem>>, vector<1x8xf32>,
    return
  }
  func.func @transform_0(%arg0: i32) -> (i32, i32) {
    %c0_i32 = arith.constant 0 : i32
    %c0_i32_0 = arith.constant 0 : i32
    return %c0_i32, %arg0 : i32, i32
  }
  func.func @transform_1(%arg0: i32) -> (i32, i32) {
    %c0_i32 = arith.constant 0 : i32
    %c0_i32_0 = arith.constant 0 : i32
    return %c0_i32, %arg0 : i32, i32
  }
  func.func @transform_2(%arg0: i32) -> (i32, i32) {
    %c0_i32 = arith.constant 0 : i32
    %c0_i32_0 = arith.constant 0 : i32
    return %c0_i32, %arg0 : i32, i32
  }
  func.func @transform_3(%arg0: i32) -> (i32, i32) {
    %c0_i32 = arith.constant 0 : i32
    %c0_i32_0 = arith.constant 0 : i32
    return %c0_i32, %arg0 : i32, i32
  }
}

</mosaic_0001>

<bundles_post_ra>
// kernel: tpu_custom_call.1
= control target key start
LH: loop header
LB: loop body
LE: loop exit
PB: predicated region body
PF: predicated region fallthrough
CT: control target
= control target key end

     0   :  { %9 = vsyncpa [#allocation3], 0  ;;  %s305_s0 = inlined_call_operand.hbm [shape: f32[8,8], index: 0, kind: input, shape index: {}]   ;;  %s306_s1 = inlined_call_operand.hbm [shape: f32[4,8], index: 1, kind: input, shape index: {}]   ;;  %s307_s2 = inlined_call_operand.hbm [shape: f32[4,8], index: 2, kind: output, shape index: {0}]   ;;  %s308_s3 = inlined_call_operand.hbm [shape: f32[1,8], index: 3, kind: output, shape index: {1}]  }
   0x1   :  { %10 = vsyncpa [#allocation6], 0 }
   0x2   :  { %11 = vsyncpa [#allocation4], 0 }
   0x3   :  { %12 = vsyncpa [#allocation9], 0  ;;  %s231_s12 = smov [#allocation2]   ;;  %s232_s14 = smov [#allocation5]  }
   0x4   :  { %s19_s13 = sshll.u32 %s231_s12, 4  ;;  %s29_s15 = sshll.u32 %s232_s14, 4  ;;  %s20_s13 = int_to_ptr.vmem [resolvable:$true] %s19_s13  ;;  %s30_s15 = int_to_ptr.vmem [resolvable:$true] %s29_s15 }
   0x5   :  { %s135_s18 = scalar_lea.hbm %s305_s0, 128 }
   0x6   :  { %p136_p0 = scmp.ne.s32.totalorder %s305_s0, %s135_s18  ;;  %p139_p1 = scmp.lt.u32.totalorder %s135_s18, %s305_s0 }
   0x8   :  { %p141_p2 = pnand %p139_p1, %p136_p0 }
   0xa   :  { %144 = shalt.err (!%p141_p2)
}
   0xb   :  { %s145_s23 = scalar_lea.vmem %s20_s13, 128  ;;  %p150_p4 = scmp.lt.s32.totalorder %s20_s13, %s20_s13 }
   0xc   :  { %p146_p3 = scmp.ne.s32.totalorder %s20_s13, %s145_s23  ;;  %p151_p5 = scmp.lt.s32.totalorder %s145_s23, %s145_s23 }
   0xe   :  { %p152_p6 = por %p151_p5, %p150_p4 }
  0x10   :  { %p153_p7 = pnand %p152_p6, %p146_p3 }
  0x12   :  { %156 = shalt.err (!%p153_p7)
}
  0x13   :  { %22 = dma.hbm_to_vmem [thread:$0]  %s305_s0, 128, %s20_s13, [#allocation3]  }
  0x14   :  { %s157_s28 = scalar_lea.hbm %s306_s1, 64 }
  0x15   :  { %p158_p8 = scmp.ne.s32.totalorder %s306_s1, %s157_s28  ;;  %p161_p9 = scmp.lt.u32.totalorder %s157_s28, %s306_s1 }
  0x17   :  { %p163_p10 = pnand %p161_p9, %p158_p8 }
  0x19   :  { %166 = shalt.err (!%p163_p10)
}
  0x1a   :  { %s167_s6 = scalar_lea.vmem %s30_s15, 64  ;;  %p172_p12 = scmp.lt.s32.totalorder %s30_s15, %s30_s15 }
  0x1b   :  { %p168_p11 = scmp.ne.s32.totalorder %s30_s15, %s167_s6  ;;  %p173_p13 = scmp.lt.s32.totalorder %s167_s6, %s167_s6 }
  0x1d   :  { %p174_p0 = por %p173_p13, %p172_p12 }
  0x1f   :  { %p175_p1 = pnand %p174_p0, %p168_p11 }
  0x21   :  { %178 = shalt.err (!%p175_p1)
}
  0x22   :  { %32 = dma.hbm_to_vmem [thread:$0]  %s306_s1, 64, %s30_s15, [#allocation6]  }
  0x23   :  { %223 = dma.done.wait [#allocation3], 128  }
  0x24   :  { %224 = vsyncadd [#allocation3], 4294967168 }
  0x25   :  { %225 = dma.done.wait [#allocation6], 64  }
  0x26   :  { %226 = vsyncadd [#allocation6], 4294967232  ;;  %v39_v0 = vld [vmem:[#allocation2] sm:$0xff]  ;;  %v44_v4 = vld [vmem:[#allocation5] sm:$0xf]  ;;  %s233_s1 = smov [#allocation7]  }
  0x27   :  { %v40_v1 = vmax.f32 %v39_v0, -18.0  ;;  %v46_v5 = vrot.slane %v44_v4, 4  ;;  %s98_s8 = sshll.u32 %s233_s1, 4  ;;  %vm81_vm0 = vcmask 60416   ;;  %s99_s8 = int_to_ptr.vmem [resolvable:$true] %s98_s8 }
  0x28   :  { %s179_s9 = scalar_lea.vmem %s99_s8, 64  ;;  %p184_p3 = scmp.lt.s32.totalorder %s99_s8, %s99_s8 }
  0x29   :  { %v41_v2 = vmin.f32 %v40_v1, 4.6  ;;  %p180_p2 = scmp.ne.s32.totalorder %s99_s8, %s179_s9  ;;  %p185_p4 = scmp.lt.s32.totalorder %s179_s9, %s179_s9 }
  0x2b   :  { %v42_v3 = vmul.f32 1.442695, %v41_v2  ;;  %p186_p5 = por %p185_p4, %p184_p3 }
  0x2d   :  { %127 = vpow2.f32 %v42_v3  ;;  %p187_p6 = pnand %p186_p5, %p180_p2 }
  0x37   :  { %v128_v6 = vpop.eup %127 }
  0x38   :  { %v48_v7 = vmul.f32 %v128_v6, %v46_v5 }
  0x3a   :  { %v50_v8 = vrot.slane %v48_v7, 4 }
  0x3c   :  { %v52_v9 = vadd.f32 %v50_v8, %v39_v0 }
  0x3e   :  { %129 = vtanh.f32 %v52_v9  ;;  %v63_v10 = vand.u32 2147483647, %v52_v9 }
  0x40   :  { %v64_v11 = vmul.f32 -2.0, %v63_v10 }
  0x42   :  { %v65_v12 = vmul.f32 1.442695, %v64_v11 }
  0x44   :  { %131 = vpow2.f32 %v65_v12 }
  0x48   :  { %v130_v13 = vpop.eup %129 }
  0x49   :  { %82 = vst.msk [vmem:[#allocation7] sm:$0xf] %vm81_vm0, %v130_v13 }
  0x4a   :  { %190 = shalt.err (!%p187_p6)
}
  0x4b   :  { %s191_s12 = scalar_lea.hbm %s307_s2, 64 }
  0x4c   :  { %p192_p7 = scmp.ne.s32.totalorder %s307_s2, %s191_s12  ;;  %p195_p8 = scmp.lt.u32.totalorder %s191_s12, %s307_s2 }
  0x4e   :  { %p197_p9 = pnand %p195_p8, %p192_p7 }
  0x50   :  { %200 = shalt.err (!%p197_p9)
}
  0x51   :  { %101 = dma.vmem_to_hbm [thread:$0]  %s99_s8, 64, %s307_s2, [#allocation4]   ;;  %v132_v14 = vpop.eup %131  ;;  %v54_v17 = vmul.f32 -0.5, %v44_v4  ;;  %v61_v19 = vmul.f32 -2.0, %v52_v9  ;;  %v57_v22 = vrot.slane %v41_v2, 4  ;;  %vm90_vm2 = vcmask 57344  }
  0x52   :  { %v67_v15 = vadd.f32 1.0, %v132_v14  ;;  %v70_v16 = vmul.f32 -0.5, %v132_v14  ;;  %v73_v20 = vand.u32 2147483647, %v132_v14  ;;  %v77_v28 = vsub.f32 0.6931472, %v52_v9 }
  0x53   :  { %v55_v21 = vmul.f32 %v54_v17, %v44_v4  ;;  %v62_v25 = vmax.f32 %v61_v19, 0.0  ;;  %s234_s2 = smov [#allocation8]  }
  0x54   :  { %133 = vlog2.f32 %v67_v15  ;;  %v71_v18 = vadd.f32 1.0, %v70_v16  ;;  %vm74_vm1 = vcmp.lt.f32.partialorder %v73_v20, 0.0004427343  ;;  %s108_s19 = sshll.u32 %s234_s2, 4  ;;  %s109_s19 = int_to_ptr.vmem [resolvable:$true] %s108_s19 }
  0x55   :  { %v59_v27 = vsub.f32 %v55_v21, %v57_v22  ;;  %s201_s20 = scalar_lea.vmem %s109_s19, 16  ;;  %s205_s21 = scalar_lea.vmem %s109_s19, 32 }
  0x56   :  { %v72_v23 = vmul.f32 %v132_v14, %v71_v18  ;;  %p202_p10 = scmp.ne.s32.totalorder %s109_s19, %s201_s20  ;;  %p206_p11 = scmp.lt.s32.totalorder %s109_s19, %s109_s19 }
  0x57   :  { %v122_v31 = vadd.f32 -0.9189385, %v59_v27  ;;  %p207_p12 = scmp.lt.s32.totalorder %s205_s21, %s201_s20 }
  0x59   :  { %p208_p13 = por %p207_p12, %p206_p11 }
  0x5b   :  { %p209_p0 = pnand %p208_p13, %p202_p10 }
  0x5e   :  { %v134_v24 = vpop.eup %133 }
  0x5f   :  { %v69_v26 = vmul.f32 0.6931472, %v134_v24 }
  0x61   :  { %v75_v29 = vsel %vm74_vm1, %v72_v23, %v69_v26 }
  0x62   :  { %v76_v30 = vadd.f32 %v75_v29, %v62_v25 }
  0x64   :  { %v78_v32 = vsub.f32 %v77_v28, %v76_v30 }
  0x66   :  { %v79_v33 = vmul.f32 2.0, %v78_v32 }
  0x68   :  { %v80_v34 = vsub.f32 %v122_v31, %v79_v33 }
  0x6a   :  { %v83_v35 = vsel %vm81_vm0, %v80_v34, 0.0 }
  0x6b   :  { %v84_v36 = vrot.slane %v83_v35, 4 }
  0x6d   :  { %v85_v37 = vadd.f32 %v84_v36, %v83_v35 }
  0x6f   :  { %v86_v38 = vrot.slane %v85_v37, 2 }
  0x71   :  { %v87_v39 = vadd.f32 %v86_v38, %v85_v37 }
  0x73   :  { %v88_v40 = vrot.slane %v87_v39, 1 }
  0x75   :  { %v89_v41 = vadd.f32 %v88_v40, %v87_v39 }
  0x77   :  { %91 = vst.msk [vmem:[#allocation8] sm:$0x1] %vm90_vm2, %v89_v41 }
  0x78   :  { %212 = shalt.err (!%p209_p0)
}
  0x79   :  { %s213_s24 = scalar_lea.hbm %s308_s3, 16 }
  0x7a   :  { %p214_p1 = scmp.ne.s32.totalorder %s308_s3, %s213_s24  ;;  %p217_p2 = scmp.lt.u32.totalorder %s213_s24, %s308_s3 }
  0x7c   :  { %p219_p3 = pnand %p217_p2, %p214_p1 }
  0x7e   :  { %222 = shalt.err (!%p219_p3)
}
  0x7f   :  { %111 = dma.vmem_to_hbm [thread:$0]  %s109_s19, 16, %s308_s3, [#allocation9]  }
  0x80   :  { %227 = dma.done.wait [#allocation4], 64  }
  0x81   :  { %228 = vsyncadd [#allocation4], 4294967232 }
  0x82   :  { %229 = dma.done.wait [#allocation9], 16  }
  0x83   :  { %230 = vsyncadd [#allocation9], 4294967280 }
  0x84   :  { %118 = vsyncpa [#allocation3], 1 }
  0x85   :  { %119 = vsyncpa [#allocation6], 1 }
  0x86   :  { %120 = vsyncpa [#allocation4], 1 }
  0x87   :  { %121 = vsyncpa [#allocation9], 1 }

</bundles_post_ra>
